<compile_context>
chip_gen: v7x
topology: tpu7x:2x2x1
jax: 0.10.0
libtpu: 0.0.40
codegen_flags: <defaults>
</compile_context>

<pallas_src>
import numpy as np
import jax
import jax.numpy as jnp
from jax.experimental import pallas as pl
from jax.experimental.pallas import tpu as pltpu


# ---------------------------------------------------------------------------
# Fused Pallas kernel: conv1(+ReLU) -> conv2(+ReLU), everything VMEM-resident.
# ---------------------------------------------------------------------------
def _enc_fused_kernel(x_ref, m_ref, s_ref, b_ref, o_ref):
    # x_ref : (N*H, W*Cin)            batch folded into sublanes, unpadded
    # m_ref : (W*Cin + W*C1, 3*W*C1)  rows 0:W*Cin   -> conv1 banded weights
    #                                 rows W*Cin:    -> conv2 banded weights
    #                                 (3 height taps concatenated on lanes)
    # s_ref : (N*H + N*Ho, 3*N*H)     rows 0:N*H  -> conv1 tap-shift selection
    #                                 rows N*H:   -> conv2 shift+stride-2 sel.
    # b_ref : (2, W*C1)               row 0 = conv1 bias row, row 1 = conv2
    # o_ref : (N*Ho, Wo*C2)           lane-dense output slab (last dim = 128)
    nh = x_ref.shape[0]                 # N*H
    wcin = x_ref.shape[1]               # W*Cin
    wc1 = m_ref.shape[1] // 3           # W*C1
    nho = o_ref.shape[0]                # N*Ho
    woc2 = o_ref.shape[1]               # Wo*C2

    x = x_ref[...]                      # (N*H, W*Cin)
    m1w = m_ref[0:wcin, :]              # (W*Cin, 3*W*C1)
    m2w = m_ref[wcin:wcin + wc1, :]     # (W*C1, 3*Wo*C2)
    s1 = s_ref[0:nh, :]                 # (N*H, 3*N*H)
    s2 = s_ref[nh:nh + nho, :]          # (N*Ho, 3*N*H)
    b = b_ref[...]                      # (2, W*C1)
    b1 = b[0:1, :]
    b2 = b[1:2, :]

    # ---- conv1 (k=3, stride 1, pad 1) + ReLU --------------------------------
    # One wide matmul for all 3 height taps, then one selection matmul that
    # applies the tap shifts and zero height-padding exactly.
    t = jnp.dot(x, m1w, preferred_element_type=jnp.float32)          # (N*H, 3*W*C1)
    tv = jnp.concatenate(
        [t[:, 0:wc1], t[:, wc1:2 * wc1], t[:, 2 * wc1:3 * wc1]], axis=0)  # (3*N*H, W*C1)
    h1 = jnp.maximum(
        jnp.dot(s1, tv, preferred_element_type=jnp.float32) + b1, 0.0)    # (N*H, W*C1)

    # ---- conv2 (k=3, stride 2, pad 1) + ReLU --------------------------------
    # Width stride/pad is folded into m2w; height stride/pad into s2.
    t2 = jnp.dot(h1, m2w, preferred_element_type=jnp.float32)        # (N*H, 3*Wo*C2)
    tv2 = jnp.concatenate(
        [t2[:, 0:woc2], t2[:, woc2:2 * woc2], t2[:, 2 * woc2:3 * woc2]], axis=0)
    o_ref[...] = jnp.maximum(
        jnp.dot(s2, tv2, preferred_element_type=jnp.float32) + b2, 0.0)   # (N*Ho, Wo*C2)


# ---------------------------------------------------------------------------
# Parameters + one-time constant preparation (hoisted out of the forward path)
# ---------------------------------------------------------------------------
def init_enc_params(key, cin=4, c1=8, c2=16, k=3):
    k1, k2, k3, k4 = jax.random.split(key, 4)
    s1 = 1.0 / jnp.sqrt(cin * k * k)
    s2 = 1.0 / jnp.sqrt(c1 * k * k)
    return {
        "w1": jax.random.normal(k1, (c1, cin, k, k), jnp.float32) * s1,
        "b1": jax.random.normal(k2, (c1,), jnp.float32) * s1,
        "w2": jax.random.normal(k3, (c2, c1, k, k), jnp.float32) * s2,
        "b2": jax.random.normal(k4, (c2,), jnp.float32) * s2,
    }


def make_enc_constants(params, n, cin, h, w):
    """Fold conv weights into banded matmul / selection matrices ONCE (numpy)."""
    w1 = np.asarray(params["w1"])
    b1 = np.asarray(params["b1"])
    w2 = np.asarray(params["w2"])
    b2 = np.asarray(params["b2"])
    c1, _, K, _ = w1.shape
    c2 = w2.shape[0]
    ho, wo = h // 2, w // 2
    nh, nho = n * h, n * ho
    assert w * c1 == wo * c2, "packed bias / M lane widths must match"

    # conv1 banded weights: M1[kh][wi*Cin+c, w_*C1+o] = w1[o,c,kh,kw], wi = w_+kw-1
    m1 = np.zeros((K, w * cin, w * c1), np.float32)
    for kh in range(K):
        for kw in range(K):
            for wout in range(w):
                wi = wout + kw - 1
                if 0 <= wi < w:
                    m1[kh, wi * cin:(wi + 1) * cin,
                       wout * c1:(wout + 1) * c1] = w1[:, :, kh, kw].T
    m1w = np.concatenate([m1[kh] for kh in range(K)], axis=1)       # (W*Cin, 3*W*C1)

    # conv2 banded weights (width stride 2, pad 1 folded into the band)
    m2 = np.zeros((K, w * c1, wo * c2), np.float32)
    for kh in range(K):
        for kw in range(K):
            for wout in range(wo):
                wi = 2 * wout + kw - 1
                if 0 <= wi < w:
                    m2[kh, wi * c1:(wi + 1) * c1,
                       wout * c2:(wout + 1) * c2] = w2[:, :, kh, kw].T
    m2w = np.concatenate([m2[kh] for kh in range(K)], axis=1)       # (W*C1, 3*Wo*C2)
    m_pack = np.concatenate([m1w, m2w], axis=0)                      # (192, 384)

    # conv1 height-tap selection (block-diagonal over batch, zero-pad exact)
    s1m = np.zeros((nh, K * nh), np.float32)
    for nn in range(n):
        for hh in range(h):
            for kh in range(K):
                hi = hh + kh - 1
                if 0 <= hi < h:
                    s1m[nn * h + hh, kh * nh + nn * h + hi] = 1.0
    # conv2 height-tap selection with stride-2 decimation + zero-pad
    s2m = np.zeros((nho, K * nh), np.float32)
    for nn in range(n):
        for hh in range(ho):
            for kh in range(K):
                hi = 2 * hh + kh - 1
                if 0 <= hi < h:
                    s2m[nn * ho + hh, kh * nh + nn * h + hi] = 1.0
    s_pack = np.concatenate([s1m, s2m], axis=0)                      # (48, 96)

    b_pack = np.concatenate([np.tile(b1, w)[None, :],
                             np.tile(b2, wo)[None, :]], axis=0)      # (2, 128)

    return {"m": jnp.asarray(m_pack),
            "s": jnp.asarray(s_pack),
            "b": jnp.asarray(b_pack)}


# ---------------------------------------------------------------------------
# Enc.forward equivalent
# ---------------------------------------------------------------------------
@jax.jit
def enc_forward(consts, x_nchw):
    # TODO(synk): `generator.enc` is undefined in the provided source; this is
    # a synthesized 2-layer conv encoder standing in for it.
    n, cin, h, w = x_nchw.shape
    nh = n * h
    nho = consts["s"].shape[0] - nh            # N*Ho
    woc2 = consts["m"].shape[1] // 3           # Wo*C2
    ho = nho // n
    wo = w // 2
    c2 = woc2 // wo

    # Only per-call glue: NCHW -> (N*H, W*Cin) slab (batch folded to sublanes).
    x_slab = jnp.transpose(x_nchw, (0, 2, 3, 1)).reshape(nh, w * cin)

    out_slab = pl.pallas_call(
        _enc_fused_kernel,
        out_shape=jax.ShapeDtypeStruct((nho, woc2), jnp.float32),
        in_specs=[pl.BlockSpec(memory_space=pltpu.MemorySpace.VMEM)] * 4,
        out_specs=pl.BlockSpec(memory_space=pltpu.MemorySpace.VMEM),
    )(x_slab, consts["m"], consts["s"], consts["b"])

    out = out_slab.reshape(n, ho, wo, c2)
    return jnp.transpose(out, (0, 3, 1, 2))    # (N, C2, Ho, Wo)


# ---------------------------------------------------------------------------
# Pure-JAX reference (im2col) used only to validate the fused kernel.
# ---------------------------------------------------------------------------
def _conv2d_relu_reference(x_nchw, weight, bias, *, stride, padding):
    N, Cin, H, W = x_nchw.shape
    Cout, _, KH, KW = weight.shape
    Ho = (H + 2 * padding - KH) // stride + 1
    Wo = (W + 2 * padding - KW) // stride + 1
    x = jnp.transpose(x_nchw, (0, 2, 3, 1))
    x = jnp.pad(x, ((0, 0), (padding, padding), (padding, padding), (0, 0)))
    cols = []
    for kh in range(KH):
        for kw in range(KW):
            cols.append(x[:,
                          kh: kh + stride * (Ho - 1) + 1: stride,
                          kw: kw + stride * (Wo - 1) + 1: stride, :])
    patches = jnp.concatenate(cols, axis=-1).reshape(N * Ho * Wo, KH * KW * Cin)
    w_mat = jnp.transpose(weight, (2, 3, 1, 0)).reshape(KH * KW * Cin, Cout)
    out = jnp.maximum(patches @ w_mat + bias, 0.0)
    return jnp.transpose(out.reshape(N, Ho, Wo, Cout), (0, 3, 1, 2))


def enc_reference(params, x):
    h = _conv2d_relu_reference(x, params["w1"], params["b1"], stride=1, padding=1)
    return _conv2d_relu_reference(h, params["w2"], params["b2"], stride=2, padding=1)


if __name__ == "__main__":
    key = jax.random.PRNGKey(0)
    kx, kp = jax.random.split(key)

    # NCHW input, small shapes: batch=2, channels=4, spatial=16x16
    x = jax.random.normal(kx, (2, 4, 16, 16), jnp.float32)
    params = init_enc_params(kp)

    # One-time constant folding (hoisted out of the per-call path).
    consts = make_enc_constants(params, n=2, cin=4, h=16, w=16)

    y = enc_forward(consts, x)
    jax.block_until_ready(y)

    assert y.shape == (2, 16, 8, 8), y.shape
    y_ref = enc_reference(params, x)
    max_err = float(jnp.max(jnp.abs(y - y_ref)))
    assert jnp.allclose(y, y_ref, atol=1e-4, rtol=1e-4), max_err

    print("KERNEL_OK")
</pallas_src>

<mosaic_0001>
module attributes {stable_mosaic.version = 11 : i64} {
  func.func @_enc_fused_kernel(%arg0: memref<32x64xf32, #tpu.memory_space<vmem>>, %arg1: memref<192x384xf32, #tpu.memory_space<vmem>>, %arg2: memref<48x96xf32, #tpu.memory_space<vmem>>, %arg3: memref<2x128xf32, #tpu.memory_space<vmem>>, %arg4: memref<16x128xf32, #tpu.memory_space<vmem>>) attributes {dimension_semantics = [], scalar_prefetch = 0 : i64, scratch_operands = 0 : i64, tpu.core_type = #tpu.core_type<tc>} {
    %c0 = arith.constant 0 : index
    %c0_0 = arith.constant 0 : index
    %0 = vector.load %arg0[%c0, %c0_0] : memref<32x64xf32, #tpu.memory_space<vmem>>, vector<32x64xf32>
    %c0_1 = arith.constant 0 : index
    %c0_2 = arith.constant 0 : index
    %1 = vector.load %arg1[%c0_1, %c0_2] : memref<192x384xf32, #tpu.memory_space<vmem>>, vector<64x384xf32>
    %c64 = arith.constant 64 : index
    %c0_3 = arith.constant 0 : index
    %2 = vector.load %arg1[%c64, %c0_3] : memref<192x384xf32, #tpu.memory_space<vmem>>, vector<128x384xf32>
    %c0_4 = arith.constant 0 : index
    %c0_5 = arith.constant 0 : index
    %3 = vector.load %arg2[%c0_4, %c0_5] : memref<48x96xf32, #tpu.memory_space<vmem>>, vector<32x96xf32>
    %c32 = arith.constant 32 : index
    %c0_6 = arith.constant 0 : index
    %4 = vector.load %arg2[%c32, %c0_6] : memref<48x96xf32, #tpu.memory_space<vmem>>, vector<16x96xf32>
    %c0_7 = arith.constant 0 : index
    %c0_8 = arith.constant 0 : index
    %5 = vector.load %arg3[%c0_7, %c0_8] : memref<2x128xf32, #tpu.memory_space<vmem>>, vector<2x128xf32>
    %6 = vector.extract_strided_slice %5 {offsets = [0, 0], sizes = [1, 128], strides = [1, 1]} : vector<2x128xf32> to vector<1x128xf32>
    %7 = vector.extract_strided_slice %5 {offsets = [1, 0], sizes = [1, 128], strides = [1, 1]} : vector<2x128xf32> to vector<1x128xf32>
    %cst = arith.constant dense<0.000000e+00> : vector<32x384xf32>
    %8 = tpu.matmul %0, %1, %cst {dimension_numbers = #tpu.dot_dimension_numbers<[1], [0], [0], [1], [0, 0, 1, 1], [], []>} : vector<32x64xf32>, vector<64x384xf32>, vector<32x384xf32> -> vector<32x384xf32>
    %9 = vector.extract_strided_slice %8 {offsets = [0, 0], sizes = [32, 128], strides = [1, 1]} : vector<32x384xf32> to vector<32x128xf32>
    %10 = vector.extract_strided_slice %8 {offsets = [0, 128], sizes = [32, 128], strides = [1, 1]} : vector<32x384xf32> to vector<32x128xf32>
    %11 = vector.extract_strided_slice %8 {offsets = [0, 256], sizes = [32, 128], strides = [1, 1]} : vector<32x384xf32> to vector<32x128xf32>
    %12 = tpu.concatenate %9, %10, %11 in 0 : vector<32x128xf32>, vector<32x128xf32>, vector<32x128xf32> -> vector<96x128xf32>
    %cst_9 = arith.constant dense<0.000000e+00> : vector<32x128xf32>
    %13 = tpu.matmul %3, %12, %cst_9 {dimension_numbers = #tpu.dot_dimension_numbers<[1], [0], [0], [1], [0, 0, 1, 1], [], []>} : vector<32x96xf32>, vector<96x128xf32>, vector<32x128xf32> -> vector<32x128xf32>
    %14 = vector.broadcast %6 : vector<1x128xf32> to vector<32x128xf32>
    %15 = arith.addf %13, %14 : vector<32x128xf32>
    %cst_10 = arith.constant 0.000000e+00 : f32
    %16 = vector.broadcast %cst_10 : f32 to vector<32x128xf32>
    %17 = arith.maximumf %15, %16 : vector<32x128xf32>
    %cst_11 = arith.constant dense<0.000000e+00> : vector<32x384xf32>
    %18 = tpu.matmul %17, %2, %cst_11 {dimension_numbers = #tpu.dot_dimension_numbers<[1], [0], [0], [1], [0, 0, 1, 1], [], []>} : vector<32x128xf32>, vector<128x384xf32>, vector<32x384xf32> -> vector<32x384xf32>
    %19 = vector.extract_strided_slice %18 {offsets = [0, 0], sizes = [32, 128], strides = [1, 1]} : vector<32x384xf32> to vector<32x128xf32>
    %20 = vector.extract_strided_slice %18 {offsets = [0, 128], sizes = [32, 128], strides = [1, 1]} : vector<32x384xf32> to vector<32x128xf32>
    %21 = vector.extract_strided_slice %18 {offsets = [0, 256], sizes = [32, 128], strides = [1, 1]} : vector<32x384xf32> to vector<32x128xf32>
    %22 = tpu.concatenate %19, %20, %21 in 0 : vector<32x128xf32>, vector<32x128xf32>, vector<32x128xf32> -> vector<96x128xf32>
    %cst_12 = arith.constant dense<0.000000e+00> : vector<16x128xf32>
    %23 = tpu.matmul %4, %22, %cst_12 {dimension_numbers = #tpu.dot_dimension_numbers<[1], [0], [0], [1], [0, 0, 1, 1], [], []>} : vector<16x96xf32>, vector<96x128xf32>, vector<16x128xf32> -> vector<16x128xf32>
    %24 = vector.broadcast %7 : vector<1x128xf32> to vector<16x128xf32>
    %25 = arith.addf %23, %24 : vector<16x128xf32>
    %cst_13 = arith.constant 0.000000e+00 : f32
    %26 = vector.broadcast %cst_13 : f32 to vector<16x128xf32>
    %27 = arith.maximumf %25, %26 : vector<16x128xf32>
    %c0_14 = arith.constant 0 : index
    %c0_15 = arith.constant 0 : index
    %28 = vector.load %arg4[%c0_14, %c0_15] : memref<16x128xf32, #tpu.memory_space<vmem>>, vector<16x128xf32>
    tpu.vector_store %arg4[%c0_14, %c0_15], %27 {strides = array<i32>} : memref<16x128xf32, #tpu.memory_space<vmem>>, vector<16x128xf32>,
    return
  }
}

</mosaic_0001>

<bundles_post_ra>
// kernel: enc_forward.1
= control target key start
LH: loop header
LB: loop body
LE: loop exit
PB: predicated region body
PF: predicated region fallthrough
CT: control target
= control target key end

     0   :  { %9 = vsyncpa [#allocation3], 0  ;;  %s1040_s15 = smov [#allocation2]   ;;  %s1146_s0 = inlined_call_operand.vmem [shape: f32[32,64], index: 0, kind: input, shape index: {}]   ;;  %s1147_s1 = inlined_call_operand.hbm [shape: f32[192,384], index: 1, kind: input, shape index: {}]   ;;  %s1148_s2 = inlined_call_operand.vmem [shape: f32[48,96], index: 2, kind: input, shape index: {}]   ;;  %s1149_s3 = inlined_call_operand.vmem [shape: f32[2,128], index: 3, kind: input, shape index: {}]   ;;  %s1150_s4 = inlined_call_operand.vmem [shape: f32[16,128], index: 4, kind: output, shape index: {}]  }
   0x1   :  { %s17_s16 = sshll.u32 %s1040_s15, 4  ;;  %s1016_s19 = scalar_lea.hbm %s1147_s1, 9216  ;;  %s18_s16 = int_to_ptr.vmem [resolvable:$true] %s17_s16 }
   0x2   :  { %p1017_p0 = scmp.ne.s32.totalorder %s1147_s1, %s1016_s19  ;;  %p1020_p1 = scmp.lt.u32.totalorder %s1016_s19, %s1147_s1 }
   0x4   :  { %p1022_p2 = pnand %p1020_p1, %p1017_p0 }
   0x6   :  { %1025 = shalt.err (!%p1022_p2)
}
   0x7   :  { %s1026_s24 = scalar_lea.vmem %s18_s16, 9216  ;;  %p1031_p4 = scmp.lt.s32.totalorder %s18_s16, %s18_s16 }
   0x8   :  { %p1027_p3 = scmp.ne.s32.totalorder %s18_s16, %s1026_s24  ;;  %p1032_p5 = scmp.lt.s32.totalorder %s1026_s24, %s1026_s24 }
   0xa   :  { %p1033_p6 = por %p1032_p5, %p1031_p4 }
   0xc   :  { %p1034_p7 = pnand %p1033_p6, %p1027_p3 }
   0xe   :  { %1037 = shalt.err (!%p1034_p7)
}
   0xf   :  { %s1041_s25 = smov 384   ;;  %s1042_s26 = smov 24  }
  0x10   :  { %23 = dma.hbm_to_vmem [thread:$0]  %s1147_s1, 9216, %s18_s16, [#allocation3], %s1041_s25, %s1041_s25, %s1042_s26  }
  0x11   :  { %1038 = dma.done.wait [#allocation3], 9216  }
  0x12   :  { %1039 = vsyncadd [#allocation3], 4294958080  ;;  %v1043_v0 = vmov 0.0   ;;  %v36_v1 = vld [vmem:[#allocation2 + $0x8] sm:$0xff]  ;;  %v39_v2 = vld [vmem:[#allocation2 + $0x20] sm:$0xff]  ;;  %vm114_vm0 = vcmask 523264  }
  0x13   :  { %191 = vmatprep.mubr.f32.mxu0 %v1043_v0  ;;  %v35_v3 = vld [vmem:[#allocation2] sm:$0xff]  ;;  %v868_v4 = vpack.c.bf16 %v39_v2, %v36_v1  ;;  %v38_v5 = vld [vmem:[#allocation2 + $0x18] sm:$0xff]  ;;  %v45_v7 = vld [vmem:[#allocation2 + $0x50] sm:$0xff]  ;;  %vm305_vm1 = vcmask 785408  }
  0x14   :  { %v42_v6 = vld [vmem:[#allocation2 + $0x38] sm:$0xff]  ;;  %v870_v8 = vpack.c.bf16 %v38_v5, %v35_v3  ;;  %v41_v10 = vld [vmem:[#allocation2 + $0x30] sm:$0xff]  ;;  %v44_v11 = vld [vmem:[#allocation2 + $0x48] sm:$0xff] }
  0x15   :  { %v872_v9 = vpack.c.bf16 %v45_v7, %v42_v6  ;;  %v48_v12 = vld [vmem:[#allocation2 + $0x68] sm:$0xff]  ;;  %869 = vmatprep.subr.bf16.mxu0 %v868_v4  ;;  %v51_v13 = vld [vmem:[#allocation2 + $0x80] sm:$0xff]  ;;  %v874_v14 = vpack.c.bf16 %v44_v11, %v41_v10  ;;  %v50_v17 = vld [vmem:[#allocation2 + $0x78] sm:$0xff] }
  0x16   :  { %871 = vmatpush1.bf16.msra.mxu0 %v870_v8  ;;  %v47_v15 = vld [vmem:[#allocation2 + $0x60] sm:$0xff]  ;;  %v876_v16 = vpack.c.bf16 %v51_v13, %v48_v12  ;;  %v54_v18 = vld [vmem:[#allocation2 + $0x98] sm:$0xff]  ;;  %v57_v20 = vld [vmem:[#allocation2 + $0xb0] sm:$0xff] }
  0x17   :  { %873 = vmatprep.subr.bf16.mxu0 %v872_v9  ;;  %v31_v19 = vld [vmem:[%s1146_s0] sm:$0xff]  ;;  %v37_v21 = vld [vmem:[#allocation2 + $0x10] sm:$0xff]  ;;  %v40_v22 = vld [vmem:[#allocation2 + $0x28] sm:$0xff]  ;;  %v878_v26 = vpack.c.bf16 %v50_v17, %v47_v15  ;;  %v880_v30 = vpack.c.bf16 %v57_v20, %v54_v18 }
  0x18   :  { %767 = vmatprep.mubr.msk.f32.mxu1 %vm114_vm0, %v31_v19  ;;  %v884_v23 = vpack.c.bf16 %v40_v22, %v37_v21  ;;  %v43_v24 = vld [vmem:[#allocation2 + $0x40] sm:$0xff]  ;;  %v46_v25 = vld [vmem:[#allocation2 + $0x58] sm:$0xff]  ;;  %v49_v28 = vld [vmem:[#allocation2 + $0x70] sm:$0xff] }
  0x19   :  { %v888_v27 = vpack.c.bf16 %v46_v25, %v43_v24  ;;  %v52_v29 = vld [vmem:[#allocation2 + $0x88] sm:$0xff]  ;;  %v53_v31 = vld [vmem:[#allocation2 + $0x90] sm:$0xff]  ;;  %v55_v35 = vld [vmem:[#allocation2 + $0xa0] sm:$0xff] }
  0x1a   :  { %875 = vmatpush1.bf16.msra.mxu0 %v874_v14  ;;  %v56_v32 = vld [vmem:[#allocation2 + $0xa8] sm:$0xff]  ;;  %885 = vmatprep.subr.bf16.mxu1 %v884_v23  ;;  %v892_v33 = vpack.c.bf16 %v52_v29, %v49_v28  ;;  %v58_v36 = vld [vmem:[#allocation2 + $0xb8] sm:$0xff]  ;;  %v33_v39 = vld [vmem:[%s1146_s0 + $0x10] sm:$0xff] }
  0x1b   :  { %877 = vmatprep.subr.bf16.mxu0 %v876_v16  ;;  %887 = vmatpush3.bf16.msra.mxu1 %v884_v23  ;;  %v882_v34 = vpack.c.bf16 %v56_v32, %v53_v31  ;;  %v896_v37 = vpack.c.bf16 %v58_v36, %v55_v35  ;;  %v32_v38 = vld [vmem:[%s1146_s0 + $0x8] sm:$0xff]  ;;  %v34_v40 = vld [vmem:[%s1146_s0 + $0x18] sm:$0xff]  ;;  %v107_v41 = vld [vmem:[%s1148_s2] sm:$0xff] }
  0x1c   :  { %889 = vmatprep.subr.bf16.mxu1 %v888_v27  ;;  %v60_v42 = vld [vmem:[#allocation2 + $0xc8] sm:$0xff]  ;;  %v63_v43 = vld [vmem:[#allocation2 + $0xe0] sm:$0xff]  ;;  %v62_v46 = vld [vmem:[#allocation2 + $0xd8] sm:$0xff] }
  0x1d   :  { %v59_v44 = vld [vmem:[#allocation2 + $0xc0] sm:$0xff]  ;;  %v924_v45 = vpack.c.bf16 %v63_v43, %v60_v42  ;;  %v66_v48 = vld [vmem:[#allocation2 + $0xf8] sm:$0xff]  ;;  %v69_v49 = vld [vmem:[#allocation2 + $0x110] sm:$0xff] }
  0x1e   :  { %879 = vmatpush1.bf16.msra.mxu0 %v878_v26  ;;  %v926_v47 = vpack.c.bf16 %v62_v46, %v59_v44  ;;  %v65_v50 = vld [vmem:[#allocation2 + $0xf0] sm:$0xff]  ;;  %v928_v51 = vpack.c.bf16 %v69_v49, %v66_v48  ;;  %v68_v52 = vld [vmem:[#allocation2 + $0x108] sm:$0xff]  ;;  %v75_v55 = vld [vmem:[#allocation2 + $0x140] sm:$0xff] }
  0x1f   :  { %881 = vmatprep.subr.bf16.mxu0 %v880_v30  ;;  %891 = vmatpush3.bf16.msra.mxu1 %v888_v27  ;;  %v930_v53 = vpack.c.bf16 %v68_v52, %v65_v50  ;;  %v72_v54 = vld [vmem:[#allocation2 + $0x128] sm:$0xff]  ;;  %v71_v57 = vld [vmem:[#allocation2 + $0x120] sm:$0xff]  ;;  %v74_v58 = vld [vmem:[#allocation2 + $0x138] sm:$0xff] }
  0x20   :  { %893 = vmatprep.subr.bf16.mxu1 %v892_v33  ;;  %v932_v56 = vpack.c.bf16 %v75_v55, %v72_v54  ;;  %v78_v59 = vld [vmem:[#allocation2 + $0x158] sm:$0xff]  ;;  %v81_v60 = vld [vmem:[#allocation2 + $0x170] sm:$0xff]  ;;  %v934_v61 = vpack.c.bf16 %v74_v58, %v71_v57  ;;  %v80_v1 = vld [vmem:[#allocation2 + $0x168] sm:$0xff] }
  0x21   :  { %v936_v62 = vpack.c.bf16 %v81_v60, %v78_v59  ;;  %v77_v63 = vld [vmem:[#allocation2 + $0x150] sm:$0xff]  ;;  %v84_v2 = vld [vmem:[#allocation2 + $0x188] sm:$0xff]  ;;  %v87_v3 = vld [vmem:[#allocation2 + $0x1a0] sm:$0xff] }
  0x22   :  { %883 = vmatpush1.bf16.msra.mxu0 %v882_v34  ;;  %v938_v4 = vpack.c.bf16 %v80_v1, %v77_v63  ;;  %v940_v5 = vpack.c.bf16 %v87_v3, %v84_v2  ;;  %v83_v6 = vld [vmem:[#allocation2 + $0x180] sm:$0xff]  ;;  %v86_v7 = vld [vmem:[#allocation2 + $0x198] sm:$0xff]  ;;  %v93_v9 = vld [vmem:[#allocation2 + $0x1d0] sm:$0xff] }
  0x23   :  { %895 = vmatpush3.bf16.msra.mxu1 %v892_v33  ;;  %v90_v8 = vld [vmem:[#allocation2 + $0x1b8] sm:$0xff]  ;;  %v942_v10 = vpack.c.bf16 %v86_v7, %v83_v6  ;;  %v89_v12 = vld [vmem:[#allocation2 + $0x1b0] sm:$0xff]  ;;  %v92_v13 = vld [vmem:[#allocation2 + $0x1c8] sm:$0xff] }
  0x24   :  { %897 = vmatprep.subr.bf16.mxu1 %v896_v37  ;;  %v944_v11 = vpack.c.bf16 %v93_v9, %v90_v8  ;;  %v96_v14 = vld [vmem:[#allocation2 + $0x1e8] sm:$0xff]  ;;  %v99_v15 = vld [vmem:[#allocation2 + $0x200] sm:$0xff]  ;;  %v946_v16 = vpack.c.bf16 %v92_v13, %v89_v12  ;;  %v70_v43 = vld [vmem:[#allocation2 + $0x118] sm:$0xff]  ;;  %v301_v9 = vlaneseq }
  0x25   :  { %675 = vmatmul.mubr.msk.f32.vlgmr.msra.gmra.mrb[0].mxu0 %vm114_vm0, %v31_v19  ;;  %v948_v17 = vpack.c.bf16 %v99_v15, %v96_v14  ;;  %v95_v18 = vld [vmem:[#allocation2 + $0x1e0] sm:$0xff]  ;;  %v98_v19 = vld [vmem:[#allocation2 + $0x1f8] sm:$0xff]  ;;  %v108_v44 = vld [vmem:[%s1148_s2 + $0x8] sm:$0xff] }
  0x26   :  { %197 = vmatprep.mubr.f32.mxu0 %v1043_v0  ;;  %v950_v20 = vpack.c.bf16 %v98_v19, %v95_v18  ;;  %v67_v42 = vld [vmem:[#allocation2 + $0x100] sm:$0xff]  ;;  %v76_v48 = vld [vmem:[#allocation2 + $0x148] sm:$0xff]  ;;  %v110_v49 = vld [vmem:[%s1148_s2 + $0x18] sm:$0xff] }
  0x27   :  { %899 = vmatpush3.bf16.msra.mxu1 %v896_v37  ;;  %v960_v46 = vpack.c.bf16 %v70_v43, %v67_v42  ;;  %v82_v52 = vld [vmem:[#allocation2 + $0x178] sm:$0xff]  ;;  %v85_v54 = vld [vmem:[#allocation2 + $0x190] sm:$0xff]  ;;  %v88_v55 = vld [vmem:[#allocation2 + $0x1a8] sm:$0xff] }
  0x28   :  { %925 = vmatprep.subr.bf16.mxu1 %v924_v45  ;;  %v109_v45 = vld [vmem:[%s1148_s2 + $0x10] sm:$0xff]  ;;  %v91_v57 = vld [vmem:[#allocation2 + $0x1c0] sm:$0xff]  ;;  %v94_v58 = vld [vmem:[#allocation2 + $0x1d8] sm:$0xff] }
  0x29   :  { %676 = vmatmul.mubr.msk.f32.gmra.mrb[2].mxu0 %vm114_vm0, %v32_v38  ;;  %v976_v59 = vpack.c.bf16 %v94_v58, %v91_v57  ;;  %v97_v60 = vld [vmem:[#allocation2 + $0x1f0] sm:$0xff]  ;;  %v102_v63 = vld [vmem:[#allocation2 + $0x218] sm:$0xff]  ;;  %v113_v12 = vld [vmem:[%s1149_s3] sm:$0x3] }
  0x2a   :  { %203 = vmatprep.mubr.f32.mxu0 %v1043_v0  ;;  %768 = vmatmul.mubr.msk.f32.vlgmr.msra.gmra.mrb[0].mxu1 %vm114_vm0, %v32_v38  ;;  %v105_v1 = vld [vmem:[#allocation2 + $0x230] sm:$0xff]  ;;  %v106_v7 = vld [vmem:[#allocation2 + $0x238] sm:$0xff] }
  0x2b   :  { %770 = vmatprep.mubr.msk.f32.mxu1 %vm114_vm0, %v33_v39  ;;  %927 = vmatpush1.bf16.msra.mxu1 %v926_v47  ;;  %v73_v47 = vld [vmem:[#allocation2 + $0x130] sm:$0xff]  ;;  %v952_v2 = vpack.c.bf16 %v105_v1, %v102_v63 }
  0x2c   :  { %929 = vmatprep.subr.bf16.mxu1 %v928_v51  ;;  %v964_v50 = vpack.c.bf16 %v76_v48, %v73_v47  ;;  %v79_v51 = vld [vmem:[#allocation2 + $0x160] sm:$0xff]  ;;  %v101_v3 = vld [vmem:[#allocation2 + $0x210] sm:$0xff] }
  0x2d   :  { %677 = vmatmul.mubr.msk.f32.gmra.mrb[4].mxu0 %vm114_vm0, %v33_v39  ;;  %v61_v39 = vld [vmem:[#allocation2 + $0xd0] sm:$0xff] }
  0x2e   :  { %209 = vmatprep.mubr.f32.mxu0 %v1043_v0  ;;  %771 = vmatmul.mubr.msk.f32.gmra.mrb[2].mxu1 %vm114_vm0, %v34_v40 }
  0x2f   :  { %471 = vmatprep.mubr.f32.mxu1 %v1043_v0  ;;  %931 = vmatpush1.bf16.msra.mxu1 %v930_v53  ;;  %v968_v53 = vpack.c.bf16 %v82_v52, %v79_v51 }
  0x30   :  { %933 = vmatprep.subr.bf16.mxu1 %v932_v56  ;;  %v972_v56 = vpack.c.bf16 %v88_v55, %v85_v54 }
  0x31   :  { %678 = vmatmul.mubr.msk.f32.gmra.mrb[6].mxu0 %vm114_vm0, %v34_v40  ;;  %v64_v40 = vld [vmem:[#allocation2 + $0xe8] sm:$0xff] }
  0x32   :  { %797 = vmatprep.mubr.msk.f32.mxu0 %vm305_vm1, %v107_v41  ;;  %v956_v41 = vpack.c.bf16 %v64_v40, %v61_v39 }
  0x33   :  { %935 = vmatpush1.bf16.msra.mxu1 %v934_v61  ;;  %v100_v61 = vld [vmem:[#allocation2 + $0x208] sm:$0xff] }
  0x34   :  { %937 = vmatprep.subr.bf16.mxu1 %v936_v62  ;;  %v980_v62 = vpack.c.bf16 %v100_v61, %v97_v60 }
  0x37   :  { %939 = vmatpush1.bf16.msra.mxu1 %v938_v4  ;;  %v104_v4 = vld [vmem:[#allocation2 + $0x228] sm:$0xff] }
  0x38   :  { %941 = vmatprep.subr.bf16.mxu1 %v940_v5  ;;  %v103_v5 = vld [vmem:[#allocation2 + $0x220] sm:$0xff]  ;;  %v954_v6 = vpack.c.bf16 %v104_v4, %v101_v3 }
  0x39   :  { %v984_v8 = vpack.c.bf16 %v106_v7, %v103_v5 }
  0x3b   :  { %943 = vmatpush1.bf16.msra.mxu1 %v942_v10  ;;  %v1122_v10 = vshrl.u32 %v301_v9, 7 }
  0x3c   :  { %945 = vmatprep.subr.bf16.mxu1 %v944_v11 }
  0x3d   :  { %v303_v11 = vsub.s32 0, %v1122_v10 }
  0x3f   :  { %947 = vmatpush1.bf16.msra.mxu1 %v946_v16  ;;  %v304_v13 = vrot.slane %v113_v12, %v303_v11 }
  0x40   :  { %949 = vmatprep.subr.bf16.mxu1 %v948_v17 }
  0x43   :  { %951 = vmatpush1.bf16.msra.mxu1 %v950_v20 }
  0x44   :  { %953 = vmatprep.subr.bf16.mxu1 %v952_v2 }
  0x47   :  { %955 = vmatpush1.bf16.msra.mxu1 %v954_v6 }
  0xf8   :  { %v193_v21 = vpop.f32.mrb[0].mxu0 }
  0xf9   :  { %v195_v22 = vpop.f32.mrb[1].mxu0 }
  0xfc   :  { %v199_v23 = vpop.f32.mrb[2].mxu0 }
  0xfd   :  { %v900_v24 = vpack.c.bf16 %v199_v23, %v193_v21  ;;  %v201_v25 = vpop.f32.mrb[3].mxu0  ;;  %v769_v27 = vpop.f32.mrb[0].mxu1 }
  0xfe   :  { %v908_v26 = vpack.c.bf16 %v201_v25, %v195_v22  ;;  %v282_v28 = vpop.f32.mrb[1].mxu1 }
  0xff   :  { %901 = vmatprep.subr.bf16.mxu0 %v900_v24  ;;  %v916_v30 = vpack.c.bf16 %v769_v27, %v282_v28 }
 0x100   :  { %v205_v29 = vpop.f32.mrb[4].mxu0  ;;  %903 = vmatpush3.bf16.msra.mxu0 %v900_v24 }
 0x101   :  { %v207_v31 = vpop.f32.mrb[5].mxu0  ;;  %v772_v32 = vpop.f32.mrb[2].mxu1 }
 0x102   :  { %v292_v33 = vpop.f32.mrb[3].mxu1 }
 0x103   :  { %v920_v35 = vpack.c.bf16 %v772_v32, %v292_v33 }
 0x104   :  { %v211_v34 = vpop.f32.mrb[6].mxu0 }
 0x105   :  { %v904_v36 = vpack.c.bf16 %v211_v34, %v205_v29  ;;  %v213_v37 = vpop.f32.mrb[7].mxu0 }
 0x106   :  { %v912_v38 = vpack.c.bf16 %v213_v37, %v207_v31 }
 0x107   :  { %905 = vmatprep.subr.bf16.mxu0 %v904_v36 }
 0x108   :  { %907 = vmatpush3.bf16.msra.mxu0 %v904_v36 }
 0x109   :  { %909 = vmatprep.subr.bf16.mxu0 %v908_v26 }
 0x10c   :  { %911 = vmatpush3.bf16.msra.mxu0 %v908_v26  ;;  %v111_v26 = vld [vmem:[%s1148_s2 + $0x20] sm:$0xff] }
 0x10d   :  { %913 = vmatprep.subr.bf16.mxu0 %v912_v38 }
 0x110   :  { %915 = vmatpush3.bf16.msra.mxu0 %v912_v38 }
 0x111   :  { %917 = vmatprep.subr.bf16.mxu0 %v916_v30 }
 0x114   :  { %919 = vmatpush3.bf16.msra.mxu0 %v916_v30 }
 0x115   :  { %921 = vmatprep.subr.bf16.mxu0 %v920_v35 }
 0x118   :  { %923 = vmatpush3.bf16.msra.mxu0 %v920_v35 }
 0x119   :  { %957 = vmatprep.subr.bf16.mxu0 %v956_v41 }
 0x11b   :  { %798 = vmatmul.mubr.msk.f32.vlgmr.msra.gmra.mrb[8].mxu0 %vm305_vm1, %v108_v44  ;;  %v112_v44 = vld [vmem:[%s1148_s2 + $0x28] sm:$0xff] }
 0x11c   :  { %800 = vmatprep.mubr.msk.f32.mxu0 %vm305_vm1, %v109_v45  ;;  %959 = vmatpush3.bf16.msra.mxu0 %v956_v41  ;;  %v583_v45 = vsub.s32 1, %v1122_v10 }
 0x11d   :  { %961 = vmatprep.subr.bf16.mxu0 %v960_v46 }
 0x11f   :  { %801 = vmatmul.mubr.msk.f32.gmra.mrb[10].mxu0 %vm305_vm1, %v110_v49 }
 0x120   :  { %963 = vmatpush3.bf16.msra.mxu0 %v960_v46  ;;  %v584_v46 = vrot.slane %v113_v12, %v583_v45 }
 0x121   :  { %965 = vmatprep.subr.bf16.mxu0 %v964_v50 }
 0x124   :  { %967 = vmatpush3.bf16.msra.mxu0 %v964_v50 }
 0x125   :  { %969 = vmatprep.subr.bf16.mxu0 %v968_v53 }
 0x128   :  { %971 = vmatpush3.bf16.msra.mxu0 %v968_v53 }
 0x129   :  { %973 = vmatprep.subr.bf16.mxu0 %v972_v56 }
 0x12c   :  { %975 = vmatpush3.bf16.msra.mxu0 %v972_v56 }
 0x12d   :  { %977 = vmatprep.subr.bf16.mxu0 %v976_v59 }
 0x130   :  { %979 = vmatpush3.bf16.msra.mxu0 %v976_v59 }
 0x131   :  { %981 = vmatprep.subr.bf16.mxu0 %v980_v62 }
 0x134   :  { %983 = vmatpush3.bf16.msra.mxu0 %v980_v62 }
 0x135   :  { %985 = vmatprep.subr.bf16.mxu0 %v984_v8 }
 0x138   :  { %987 = vmatpush3.bf16.msra.mxu0 %v984_v8 }
 0x1ee   :  { %v799_v14 = vpop.f32.mrb[8].mxu0 }
 0x1ef   :  { %v390_v15 = vadd.f32 %v799_v14, %v304_v13  ;;  %v384_v16 = vpop.f32.mrb[9].mxu0 }
 0x1f0   :  { %v385_v17 = vadd.f32 %v384_v16, %v304_v13 }
 0x1f1   :  { %v404_v20 = vmax.f32 %v390_v15, 0.0 }
 0x1f2   :  { %v403_v18 = vmax.f32 %v385_v17, 0.0  ;;  %v802_v19 = vpop.f32.mrb[10].mxu0 }
 0x1f3   :  { %v400_v21 = vadd.f32 %v802_v19, %v304_v13  ;;  %v394_v22 = vpop.f32.mrb[11].mxu0 }
 0x1f4   :  { %v395_v23 = vadd.f32 %v394_v22, %v304_v13  ;;  %472 = vmatmul.mubr.f32.vlgmr.msra.gmra.mrb[4].mxu1 %v403_v18  ;;  %835 = vmatprep.mubr.f32.mxu0 %v403_v18 }
 0x1f5   :  { %v406_v24 = vmax.f32 %v400_v21, 0.0  ;;  %836 = vmatmul.mubr.f32.vlgmr.msra.gmra.mrb[12].mxu0 %v404_v20  ;;  %477 = vmatprep.mubr.f32.mxu1 %v1043_v0 }
 0x1f6   :  { %v405_v25 = vmax.f32 %v395_v23, 0.0 }
 0x1f8   :  { %478 = vmatmul.mubr.f32.gmra.mrb[6].mxu1 %v404_v20  ;;  %838 = vmatprep.mubr.f32.mxu0 %v405_v25 }
 0x1f9   :  { %839 = vmatmul.mubr.f32.gmra.mrb[14].mxu0 %v406_v24  ;;  %483 = vmatprep.mubr.f32.mxu1 %v1043_v0 }
 0x1fc   :  { %484 = vmatmul.mubr.f32.gmra.mrb[8].mxu1 %v405_v25 }
 0x1fd   :  { %489 = vmatprep.mubr.f32.mxu1 %v1043_v0 }
 0x200   :  { %490 = vmatmul.mubr.f32.gmra.mrb[10].mxu1 %v406_v24 }
 0x201   :  { %865 = vmatprep.mubr.msk.f32.mxu1 %vm305_vm1, %v111_v26 }
 0x2c7   :  { %v473_v27 = vpop.f32.mrb[4].mxu1 }
 0x2c8   :  { %v475_v28 = vpop.f32.mrb[5].mxu1  ;;  %v837_v29 = vpop.f32.mrb[12].mxu0 }
 0x2c9   :  { %v562_v30 = vpop.f32.mrb[13].mxu0 }
 0x2ca   :  { %v1004_v31 = vpack.c.bf16 %v837_v29, %v562_v30 }
 0x2cb   :  { %v479_v32 = vpop.f32.mrb[6].mxu1 }
 0x2cc   :  { %v988_v33 = vpack.c.bf16 %v479_v32, %v473_v27  ;;  %v481_v34 = vpop.f32.mrb[7].mxu1  ;;  %v840_v35 = vpop.f32.mrb[14].mxu0 }
 0x2cd   :  { %v996_v36 = vpack.c.bf16 %v481_v34, %v475_v28  ;;  %v572_v37 = vpop.f32.mrb[15].mxu0 }
 0x2ce   :  { %v1008_v38 = vpack.c.bf16 %v840_v35, %v572_v37  ;;  %989 = vmatprep.subr.bf16.mxu1 %v988_v33 }
 0x2cf   :  { %v485_v0 = vpop.f32.mrb[8].mxu1  ;;  %991 = vmatpush3.bf16.msra.mxu1 %v988_v33 }
 0x2d0   :  { %v487_v39 = vpop.f32.mrb[9].mxu1 }
 0x2d3   :  { %v491_v40 = vpop.f32.mrb[10].mxu1 }
 0x2d4   :  { %v992_v41 = vpack.c.bf16 %v491_v40, %v485_v0  ;;  %v493_v42 = vpop.f32.mrb[11].mxu1 }
 0x2d5   :  { %v1000_v43 = vpack.c.bf16 %v493_v42, %v487_v39 }
 0x2d6   :  { %993 = vmatprep.subr.bf16.mxu1 %v992_v41 }
 0x2d7   :  { %995 = vmatpush3.bf16.msra.mxu1 %v992_v41 }
 0x2d8   :  { %997 = vmatprep.subr.bf16.mxu1 %v996_v36 }
 0x2db   :  { %999 = vmatpush3.bf16.msra.mxu1 %v996_v36 }
 0x2dc   :  { %1001 = vmatprep.subr.bf16.mxu1 %v1000_v43 }
 0x2df   :  { %1003 = vmatpush3.bf16.msra.mxu1 %v1000_v43 }
 0x2e0   :  { %1005 = vmatprep.subr.bf16.mxu1 %v1004_v31 }
 0x2e3   :  { %1007 = vmatpush3.bf16.msra.mxu1 %v1004_v31 }
 0x2e4   :  { %1009 = vmatprep.subr.bf16.mxu1 %v1008_v38 }
 0x2e7   :  { %1011 = vmatpush3.bf16.msra.mxu1 %v1008_v38 }
 0x2ea   :  { %866 = vmatmul.mubr.msk.f32.vlgmr.msra.gmra.mrb[12].mxu1 %vm305_vm1, %v112_v44 }
 0x3bd   :  { %v867_v47 = vpop.f32.mrb[12].mxu1 }
 0x3be   :  { %v663_v48 = vadd.f32 %v867_v47, %v584_v46  ;;  %v657_v49 = vpop.f32.mrb[13].mxu1 }
 0x3bf   :  { %v658_v50 = vadd.f32 %v657_v49, %v584_v46 }
 0x3c0   :  { %v667_v51 = vmax.f32 %v663_v48, 0.0 }
 0x3c1   :  { %v666_v52 = vmax.f32 %v658_v50, 0.0 }
 0x3c2   :  { %669 = vst [vmem:[%s1150_s4 + $0x8] sm:$0xff] %v667_v51 }
 0x3c3   :  { %668 = vst [vmem:[%s1150_s4] sm:$0xff] %v666_v52 }
 0x3c4   :  { %674 = vsyncpa [#allocation3], 1 }

</bundles_post_ra>
